<compile_context>
chip_gen: v7x
topology: tpu7x:2x2x1
jax: 0.10.0
libtpu: 0.0.40
codegen_flags: <defaults>
</compile_context>

<pallas_src>
import functools

import jax
import jax.numpy as jnp
from jax.experimental import pallas as pl
from jax.experimental.pallas import tpu as pltpu


MASK_FILL = -1000000000.0  # matches masked_fill value in the reference


def mhca_kernel(xq_ref, xkv_ref, bias_ref, wq_ref, bq_ref, wk_ref, bk_ref,
                wv_ref, bv_ref, o_ref, *, heads_per_group, head_dim, qk_scale,
                approx_recip):
    # xq_ref:   (1, Tq, C)    query activations for this batch
    # xkv_ref:  (1, Tk, C)    key/value activations for this batch
    # bias_ref: (1, Tq, Tk)   additive mask bias (0 or MASK_FILL), act dtype
    # wq/wk/wv: (C, GD)       column slice (one head group) of the projections
    # bq/bk/bv: (1, GD)       bias slice for this head group
    # o_ref:    (1, Tq, GD)   this head group's columns of the (B, Tq, C) out
    xq = xq_ref[0]     # (Tq, C)
    xkv = xkv_ref[0]   # (Tk, C)
    dt = xq.dtype
    gd = heads_per_group * head_dim

    # Grouped projections: matmul N = GD lanes (f32 MXU accumulation), then
    # cast back to the activation dtype so the attention matmuls run at the
    # fast (bf16) MXU rate in production.  The softmax scale (reference
    # divides by C**-0.5, i.e. multiplies logits by sqrt(C)) is folded into q.
    q = jnp.dot(xq, wq_ref[...], preferred_element_type=jnp.float32)
    q = ((q + bq_ref[...].astype(jnp.float32)) * qk_scale).astype(dt)   # (Tq, GD)
    k = jnp.dot(xkv, wk_ref[...], preferred_element_type=jnp.float32)
    k = (k + bk_ref[...].astype(jnp.float32)).astype(dt)                # (Tk, GD)
    v = jnp.dot(xkv, wv_ref[...], preferred_element_type=jnp.float32)
    v = (v + bv_ref[...].astype(jnp.float32)).astype(dt)                # (Tk, GD)

    bias = bias_ref[0].astype(jnp.float32)                              # (Tq, Tk)

    # Per-head attention within the group (short, unrolled at trace time).
    ys = []
    for h in range(heads_per_group):
        sl = slice(h * head_dim, (h + 1) * head_dim)
        qh, kh, vh = q[:, sl], k[:, sl], v[:, sl]                       # (T, Dh)
        s = jax.lax.dot_general(qh, kh, (((1,), (1,)), ((), ())),
                                preferred_element_type=jnp.float32)     # (Tq, Tk)
        s = s + bias
        s = s - jnp.max(s, axis=-1, keepdims=True)
        p = jnp.exp(s)                                                  # unnormalized
        l = jnp.sum(p, axis=-1, keepdims=True)                          # (Tq, 1)
        y = jnp.dot(p.astype(dt), vh, preferred_element_type=jnp.float32)
        # Normalize AFTER the PV matmul: Tq*Dh multiplies, reciprocal on the
        # EUP slot (approx only when the activations are low precision).
        y = y * pl.reciprocal(l, approx=approx_recip)
        ys.append(y.astype(o_ref.dtype))

    out = ys[0] if heads_per_group == 1 else jnp.concatenate(ys, axis=-1)
    o_ref[0] = out                                                      # (Tq, GD)


def multi_head_cross_attention(x_q, x_kv, mask, wq_t, bq, wkv_t, bkv, *,
                               n_heads, lane_target=256):
    """Fused multi-head cross attention.

    x_q:   (B, Tq, C)
    x_kv:  (B, Tk, C)
    mask:  (B, Tq, Tk) or (Tq, Tk); 0 = masked out
    wq_t:  (C, C)   == torch q_projection.weight.T
    bq:    (C,)
    wkv_t: (C, 2C)  == torch kv_projection.weight.T
    bkv:   (2C,)
    Returns (B, Tq, C).
    """
    B, Tq, C = x_q.shape
    _, Tk, _ = x_kv.shape
    assert C % n_heads == 0, "emb_dim must be divisible by n_heads"
    H = n_heads
    Dh = C // H
    dt = x_q.dtype

    # Head grouping: process G heads per grid step so matmul N / weight DMAs /
    # output stores are lane-dense.  (Use lane_target=128 on v5e.)
    G = min(H, max(1, lane_target // Dh))
    while H % G:
        G -= 1
    GD = G * Dh
    n_groups = H // G

    # Weights keep their original column layout; a head group is GD
    # consecutive columns, so each grid step DMAs exactly its slice.
    wk_t = wkv_t[:, :C]
    wv_t = wkv_t[:, C:]
    bq2 = bq.reshape(1, C)
    bk2 = bkv[:C].reshape(1, C)
    bv2 = bkv[C:].reshape(1, C)

    # Mask -> additive bias in the activation dtype; a 2-D mask is kept
    # un-broadcast (shared across batch via a constant index_map).
    mask = jnp.asarray(mask)
    if mask.ndim == 2:
        mask = mask[None]                      # (1, Tq, Tk)
    bias = jnp.where(mask == 0, MASK_FILL, 0.0).astype(dt)
    if bias.shape[0] == 1:
        bias_map = lambda b, g: (0, 0, 0)
    else:
        bias_map = lambda b, g: (b, 0, 0)

    qk_scale = float(C) ** 0.5                 # reference divides by C**-0.5
    approx_recip = jnp.dtype(dt) != jnp.dtype(jnp.float32)

    kernel = functools.partial(
        mhca_kernel, heads_per_group=G, head_dim=Dh, qk_scale=qk_scale,
        approx_recip=bool(approx_recip))

    itemsize = jnp.dtype(dt).itemsize
    w_itemsize = jnp.dtype(wq_t.dtype).itemsize
    flops = 2 * B * C * C * (Tq + 2 * Tk) + 4 * B * H * Tq * Tk * Dh
    bytes_accessed = (
        (x_q.size + x_kv.size + B * Tq * C) * itemsize
        + bias.size * itemsize
        + B * 3 * C * C * w_itemsize          # per-group weights re-fetched per batch
        + 3 * C * w_itemsize
    )

    out = pl.pallas_call(
        kernel,
        out_shape=jax.ShapeDtypeStruct((B, Tq, C), dt),
        grid_spec=pltpu.PrefetchScalarGridSpec(
            num_scalar_prefetch=0,
            # Group axis innermost: the (larger) activation blocks stay
            # resident across head groups; only the small weight slices are
            # re-fetched.  Both axes are parallel (v7x megacore).
            grid=(B, n_groups),
            in_specs=[
                pl.BlockSpec((1, Tq, C), lambda b, g: (b, 0, 0)),   # x_q
                pl.BlockSpec((1, Tk, C), lambda b, g: (b, 0, 0)),   # x_kv
                pl.BlockSpec((1, Tq, Tk), bias_map),                # mask bias
                pl.BlockSpec((C, GD), lambda b, g: (0, g)),         # Wq cols
                pl.BlockSpec((1, GD), lambda b, g: (0, g)),         # bq
                pl.BlockSpec((C, GD), lambda b, g: (0, g)),         # Wk cols
                pl.BlockSpec((1, GD), lambda b, g: (0, g)),         # bk
                pl.BlockSpec((C, GD), lambda b, g: (0, g)),         # Wv cols
                pl.BlockSpec((1, GD), lambda b, g: (0, g)),         # bv
            ],
            # Output written directly in (B, Tq, C) layout — no wrapper
            # transpose; each store is GD lanes wide.
            out_specs=pl.BlockSpec((1, Tq, GD), lambda b, g: (b, 0, g)),
        ),
        compiler_params=pltpu.CompilerParams(
            dimension_semantics=("parallel", "parallel"),
            # Explicit VMEM budget; re-derive / shrink group size for v7x
            # (64 MiB physical) with long sequences.
            vmem_limit_bytes=64 * 1024 * 1024,
        ),
        cost_estimate=pl.CostEstimate(
            flops=int(flops),
            transcendentals=int(B * H * Tq * Tk),
            bytes_accessed=int(bytes_accessed),
        ),
    )(x_q, x_kv, bias, wq_t, bq2, wk_t, bk2, wv_t, bv2)

    return out


def mhca_ref(x_q, x_kv, mask, wq_t, bq, wkv_t, bkv, *, n_heads):
    """Pure-JAX reference matching the PyTorch module exactly."""
    B, Tq, C = x_q.shape
    Tk = x_kv.shape[1]
    Dh = C // n_heads
    q = x_q @ wq_t + bq
    kv = x_kv @ wkv_t + bkv
    k, v = kv[..., :C], kv[..., C:]
    q = q.reshape(B, Tq, n_heads, Dh).transpose(0, 2, 1, 3)
    k = k.reshape(B, Tk, n_heads, Dh).transpose(0, 2, 1, 3)
    v = v.reshape(B, Tk, n_heads, Dh).transpose(0, 2, 1, 3)
    scale = jnp.float32(C) ** -0.5
    att = jnp.einsum("bhqd,bhkd->bhqk", q, k) / scale
    m = jnp.broadcast_to(jnp.asarray(mask), (B, Tq, Tk))[:, None]
    att = jnp.where(m == 0, jnp.float32(MASK_FILL), att)
    att = jax.nn.softmax(att, axis=-1)
    y = jnp.einsum("bhqk,bhkd->bhqd", att, v)
    return y.transpose(0, 2, 1, 3).reshape(B, Tq, C)


if __name__ == "__main__":
    # Small config consistent with the module: B=2, T=8, emb_dim=32, n_heads=4.
    B, T, C, H = 2, 8, 32, 4

    key = jax.random.PRNGKey(0)
    kq, kkv, kwq, kbq, kwkv, kbkv = jax.random.split(key, 6)

    x_q = jax.random.normal(kq, (B, T, C), dtype=jnp.float32)
    x_kv = jax.random.normal(kkv, (B, T, C), dtype=jnp.float32)

    # nn.Linear stores weight as (out, in); we keep the transposed (in, out)
    # layout for the kernel.
    bound = 1.0 / (C ** 0.5)
    wq_t = jax.random.uniform(kwq, (C, C), minval=-bound, maxval=bound, dtype=jnp.float32)
    bq = jax.random.uniform(kbq, (C,), minval=-bound, maxval=bound, dtype=jnp.float32)
    wkv_t = jax.random.uniform(kwkv, (C, 2 * C), minval=-bound, maxval=bound, dtype=jnp.float32)
    bkv = jax.random.uniform(kbkv, (2 * C,), minval=-bound, maxval=bound, dtype=jnp.float32)

    # Mask broadcastable to (B, T, T): pass the shared 2-D lower-triangular
    # keep-mask directly (exercises the batch-shared bias path).
    mask = jnp.tril(jnp.ones((T, T), dtype=jnp.int32))

    out = multi_head_cross_attention(x_q, x_kv, mask, wq_t, bq, wkv_t, bkv, n_heads=H)
    out = jax.block_until_ready(out)

    ref = mhca_ref(x_q, x_kv, mask, wq_t, bq, wkv_t, bkv, n_heads=H)
    assert out.shape == (B, T, C)
    # Slightly widened tolerance: scale-folding and post-PV normalization
    # reorder f32 rounding vs the reference.
    assert jnp.allclose(out, ref, atol=1e-3, rtol=1e-3), "mismatch vs reference"

    print("KERNEL_OK")
</pallas_src>

<mosaic_0001>
module attributes {stable_mosaic.version = 11 : i64} {
  func.func @mhca_kernel(%arg0: i32, %arg1: i32, %arg2: memref<1x8x32xf32, #tpu.memory_space<vmem>>, %arg3: memref<1x8x32xf32, #tpu.memory_space<vmem>>, %arg4: memref<1x8x8xf32, #tpu.memory_space<vmem>>, %arg5: memref<32x32xf32, #tpu.memory_space<vmem>>, %arg6: memref<1x32xf32, #tpu.memory_space<vmem>>, %arg7: memref<32x32xf32, #tpu.memory_space<vmem>>, %arg8: memref<1x32xf32, #tpu.memory_space<vmem>>, %arg9: memref<32x32xf32, #tpu.memory_space<vmem>>, %arg10: memref<1x32xf32, #tpu.memory_space<vmem>>, %arg11: memref<1x8x32xf32, #tpu.memory_space<vmem>>) attributes {dimension_semantics = [#tpu.dimension_semantics<parallel>, #tpu.dimension_semantics<parallel>], iteration_bounds = array<i64: 2, 1>, scalar_prefetch = 0 : i64, scratch_operands = 0 : i64, tpu.core_type = #tpu.core_type<tc>, window_params = [{transform_indices = @transform_0, window_bounds = array<i64: 1, 8, 32>}, {transform_indices = @transform_1, window_bounds = array<i64: 1, 8, 32>}, {pipeline_mode = #tpu.pipeline_mode<synchronous>, transform_indices = @transform_2, window_bounds = array<i64: 1, 8, 8>}, {transform_indices = @transform_3, window_bounds = array<i64: 32, 32>}, {transform_indices = @transform_4, window_bounds = array<i64: 1, 32>}, {transform_indices = @transform_5, window_bounds = array<i64: 32, 32>}, {transform_indices = @transform_6, window_bounds = array<i64: 1, 32>}, {transform_indices = @transform_7, window_bounds = array<i64: 32, 32>}, {transform_indices = @transform_8, window_bounds = array<i64: 1, 32>}, {transform_indices = @transform_9, window_bounds = array<i64: 1, 8, 32>}]} {
    %c0 = arith.constant 0 : index
    %c0_0 = arith.constant 0 : index
    %c0_1 = arith.constant 0 : index
    %0 = vector.load %arg2[%c0, %c0_0, %c0_1] : memref<1x8x32xf32, #tpu.memory_space<vmem>>, vector<1x8x32xf32>
    %1 = vector.shape_cast %0 : vector<1x8x32xf32> to vector<8x32xf32>
    %c0_2 = arith.constant 0 : index
    %c0_3 = arith.constant 0 : index
    %c0_4 = arith.constant 0 : index
    %2 = vector.load %arg3[%c0_2, %c0_3, %c0_4] : memref<1x8x32xf32, #tpu.memory_space<vmem>>, vector<1x8x32xf32>
    %3 = vector.shape_cast %2 : vector<1x8x32xf32> to vector<8x32xf32>
    %c0_5 = arith.constant 0 : index
    %c0_6 = arith.constant 0 : index
    %4 = vector.load %arg5[%c0_5, %c0_6] : memref<32x32xf32, #tpu.memory_space<vmem>>, vector<32x32xf32>
    %cst = arith.constant dense<0.000000e+00> : vector<8x32xf32>
    %5 = tpu.matmul %1, %4, %cst {dimension_numbers = #tpu.dot_dimension_numbers<[1], [0], [0], [1], [0, 0, 1, 1], [], []>} : vector<8x32xf32>, vector<32x32xf32>, vector<8x32xf32> -> vector<8x32xf32>
    %c0_7 = arith.constant 0 : index
    %c0_8 = arith.constant 0 : index
    %6 = vector.load %arg6[%c0_7, %c0_8] : memref<1x32xf32, #tpu.memory_space<vmem>>, vector<1x32xf32>
    %7 = vector.broadcast %6 : vector<1x32xf32> to vector<8x32xf32>
    %8 = arith.addf %5, %7 : vector<8x32xf32>
    %cst_9 = arith.constant 5.65685415 : f32
    %9 = vector.broadcast %cst_9 : f32 to vector<8x32xf32>
    %10 = arith.mulf %8, %9 : vector<8x32xf32>
    %c0_10 = arith.constant 0 : index
    %c0_11 = arith.constant 0 : index
    %11 = vector.load %arg7[%c0_10, %c0_11] : memref<32x32xf32, #tpu.memory_space<vmem>>, vector<32x32xf32>
    %cst_12 = arith.constant dense<0.000000e+00> : vector<8x32xf32>
    %12 = tpu.matmul %3, %11, %cst_12 {dimension_numbers = #tpu.dot_dimension_numbers<[1], [0], [0], [1], [0, 0, 1, 1], [], []>} : vector<8x32xf32>, vector<32x32xf32>, vector<8x32xf32> -> vector<8x32xf32>
    %c0_13 = arith.constant 0 : index
    %c0_14 = arith.constant 0 : index
    %13 = vector.load %arg8[%c0_13, %c0_14] : memref<1x32xf32, #tpu.memory_space<vmem>>, vector<1x32xf32>
    %14 = vector.broadcast %13 : vector<1x32xf32> to vector<8x32xf32>
    %15 = arith.addf %12, %14 : vector<8x32xf32>
    %c0_15 = arith.constant 0 : index
    %c0_16 = arith.constant 0 : index
    %16 = vector.load %arg9[%c0_15, %c0_16] : memref<32x32xf32, #tpu.memory_space<vmem>>, vector<32x32xf32>
    %cst_17 = arith.constant dense<0.000000e+00> : vector<8x32xf32>
    %17 = tpu.matmul %3, %16, %cst_17 {dimension_numbers = #tpu.dot_dimension_numbers<[1], [0], [0], [1], [0, 0, 1, 1], [], []>} : vector<8x32xf32>, vector<32x32xf32>, vector<8x32xf32> -> vector<8x32xf32>
    %c0_18 = arith.constant 0 : index
    %c0_19 = arith.constant 0 : index
    %18 = vector.load %arg10[%c0_18, %c0_19] : memref<1x32xf32, #tpu.memory_space<vmem>>, vector<1x32xf32>
    %19 = vector.broadcast %18 : vector<1x32xf32> to vector<8x32xf32>
    %20 = arith.addf %17, %19 : vector<8x32xf32>
    %c0_20 = arith.constant 0 : index
    %c0_21 = arith.constant 0 : index
    %c0_22 = arith.constant 0 : index
    %21 = vector.load %arg4[%c0_20, %c0_21, %c0_22] : memref<1x8x8xf32, #tpu.memory_space<vmem>>, vector<1x8x8xf32>
    %22 = vector.shape_cast %21 : vector<1x8x8xf32> to vector<8x8xf32>
    %23 = vector.extract_strided_slice %10 {offsets = [0, 0], sizes = [8, 8], strides = [1, 1]} : vector<8x32xf32> to vector<8x8xf32>
    %24 = vector.extract_strided_slice %15 {offsets = [0, 0], sizes = [8, 8], strides = [1, 1]} : vector<8x32xf32> to vector<8x8xf32>
    %25 = vector.extract_strided_slice %20 {offsets = [0, 0], sizes = [8, 8], strides = [1, 1]} : vector<8x32xf32> to vector<8x8xf32>
    %cst_23 = arith.constant dense<0.000000e+00> : vector<8x8xf32>
    %26 = tpu.matmul %23, %24, %cst_23 {dimension_numbers = #tpu.dot_dimension_numbers<[1], [1], [0], [0], [0, 0, 1, 0], [], []>} : vector<8x8xf32>, vector<8x8xf32>, vector<8x8xf32> -> vector<8x8xf32>
    %27 = arith.addf %26, %22 : vector<8x8xf32>
    %cst_24 = arith.constant dense<0xFF800000> : vector<8xf32>
    %28 = vector.multi_reduction <maximumf>, %27, %cst_24 [1] : vector<8x8xf32> to vector<8xf32>
    %29 = vector.shape_cast %28 : vector<8xf32> to vector<8x1xf32>
    %30 = vector.broadcast %29 : vector<8x1xf32> to vector<8x8xf32>
    %31 = arith.subf %27, %30 : vector<8x8xf32>
    %32 = math.exp %31 : vector<8x8xf32>
    %cst_25 = arith.constant dense<0.000000e+00> : vector<8xf32>
    %33 = vector.multi_reduction <add>, %32, %cst_25 [1] : vector<8x8xf32> to vector<8xf32>
    %34 = vector.shape_cast %33 : vector<8xf32> to vector<8x1xf32>
    %cst_26 = arith.constant dense<0.000000e+00> : vector<8x8xf32>
    %35 = tpu.matmul %32, %25, %cst_26 {dimension_numbers = #tpu.dot_dimension_numbers<[1], [0], [0], [1], [0, 0, 1, 1], [], []>} : vector<8x8xf32>, vector<8x8xf32>, vector<8x8xf32> -> vector<8x8xf32>
    %36 = tpu.reciprocal %34 : vector<8x1xf32> -> vector<8x1xf32>
    %37 = vector.broadcast %36 : vector<8x1xf32> to vector<8x8xf32>
    %38 = arith.mulf %35, %37 : vector<8x8xf32>
    %39 = vector.extract_strided_slice %10 {offsets = [0, 8], sizes = [8, 8], strides = [1, 1]} : vector<8x32xf32> to vector<8x8xf32>
    %40 = vector.extract_strided_slice %15 {offsets = [0, 8], sizes = [8, 8], strides = [1, 1]} : vector<8x32xf32> to vector<8x8xf32>
    %41 = vector.extract_strided_slice %20 {offsets = [0, 8], sizes = [8, 8], strides = [1, 1]} : vector<8x32xf32> to vector<8x8xf32>
    %cst_27 = arith.constant dense<0.000000e+00> : vector<8x8xf32>
    %42 = tpu.matmul %39, %40, %cst_27 {dimension_numbers = #tpu.dot_dimension_numbers<[1], [1], [0], [0], [0, 0, 1, 0], [], []>} : vector<8x8xf32>, vector<8x8xf32>, vector<8x8xf32> -> vector<8x8xf32>
    %43 = arith.addf %42, %22 : vector<8x8xf32>
    %cst_28 = arith.constant dense<0xFF800000> : vector<8xf32>
    %44 = vector.multi_reduction <maximumf>, %43, %cst_28 [1] : vector<8x8xf32> to vector<8xf32>
    %45 = vector.shape_cast %44 : vector<8xf32> to vector<8x1xf32>
    %46 = vector.broadcast %45 : vector<8x1xf32> to vector<8x8xf32>
    %47 = arith.subf %43, %46 : vector<8x8xf32>
    %48 = math.exp %47 : vector<8x8xf32>
    %cst_29 = arith.constant dense<0.000000e+00> : vector<8xf32>
    %49 = vector.multi_reduction <add>, %48, %cst_29 [1] : vector<8x8xf32> to vector<8xf32>
    %50 = vector.shape_cast %49 : vector<8xf32> to vector<8x1xf32>
    %cst_30 = arith.constant dense<0.000000e+00> : vector<8x8xf32>
    %51 = tpu.matmul %48, %41, %cst_30 {dimension_numbers = #tpu.dot_dimension_numbers<[1], [0], [0], [1], [0, 0, 1, 1], [], []>} : vector<8x8xf32>, vector<8x8xf32>, vector<8x8xf32> -> vector<8x8xf32>
    %52 = tpu.reciprocal %50 : vector<8x1xf32> -> vector<8x1xf32>
    %53 = vector.broadcast %52 : vector<8x1xf32> to vector<8x8xf32>
    %54 = arith.mulf %51, %53 : vector<8x8xf32>
    %55 = vector.extract_strided_slice %10 {offsets = [0, 16], sizes = [8, 8], strides = [1, 1]} : vector<8x32xf32> to vector<8x8xf32>
    %56 = vector.extract_strided_slice %15 {offsets = [0, 16], sizes = [8, 8], strides = [1, 1]} : vector<8x32xf32> to vector<8x8xf32>
    %57 = vector.extract_strided_slice %20 {offsets = [0, 16], sizes = [8, 8], strides = [1, 1]} : vector<8x32xf32> to vector<8x8xf32>
    %cst_31 = arith.constant dense<0.000000e+00> : vector<8x8xf32>
    %58 = tpu.matmul %55, %56, %cst_31 {dimension_numbers = #tpu.dot_dimension_numbers<[1], [1], [0], [0], [0, 0, 1, 0], [], []>} : vector<8x8xf32>, vector<8x8xf32>, vector<8x8xf32> -> vector<8x8xf32>
    %59 = arith.addf %58, %22 : vector<8x8xf32>
    %cst_32 = arith.constant dense<0xFF800000> : vector<8xf32>
    %60 = vector.multi_reduction <maximumf>, %59, %cst_32 [1] : vector<8x8xf32> to vector<8xf32>
    %61 = vector.shape_cast %60 : vector<8xf32> to vector<8x1xf32>
    %62 = vector.broadcast %61 : vector<8x1xf32> to vector<8x8xf32>
    %63 = arith.subf %59, %62 : vector<8x8xf32>
    %64 = math.exp %63 : vector<8x8xf32>
    %cst_33 = arith.constant dense<0.000000e+00> : vector<8xf32>
    %65 = vector.multi_reduction <add>, %64, %cst_33 [1] : vector<8x8xf32> to vector<8xf32>
    %66 = vector.shape_cast %65 : vector<8xf32> to vector<8x1xf32>
    %cst_34 = arith.constant dense<0.000000e+00> : vector<8x8xf32>
    %67 = tpu.matmul %64, %57, %cst_34 {dimension_numbers = #tpu.dot_dimension_numbers<[1], [0], [0], [1], [0, 0, 1, 1], [], []>} : vector<8x8xf32>, vector<8x8xf32>, vector<8x8xf32> -> vector<8x8xf32>
    %68 = tpu.reciprocal %66 : vector<8x1xf32> -> vector<8x1xf32>
    %69 = vector.broadcast %68 : vector<8x1xf32> to vector<8x8xf32>
    %70 = arith.mulf %67, %69 : vector<8x8xf32>
    %71 = vector.extract_strided_slice %10 {offsets = [0, 24], sizes = [8, 8], strides = [1, 1]} : vector<8x32xf32> to vector<8x8xf32>
    %72 = vector.extract_strided_slice %15 {offsets = [0, 24], sizes = [8, 8], strides = [1, 1]} : vector<8x32xf32> to vector<8x8xf32>
    %73 = vector.extract_strided_slice %20 {offsets = [0, 24], sizes = [8, 8], strides = [1, 1]} : vector<8x32xf32> to vector<8x8xf32>
    %cst_35 = arith.constant dense<0.000000e+00> : vector<8x8xf32>
    %74 = tpu.matmul %71, %72, %cst_35 {dimension_numbers = #tpu.dot_dimension_numbers<[1], [1], [0], [0], [0, 0, 1, 0], [], []>} : vector<8x8xf32>, vector<8x8xf32>, vector<8x8xf32> -> vector<8x8xf32>
    %75 = arith.addf %74, %22 : vector<8x8xf32>
    %cst_36 = arith.constant dense<0xFF800000> : vector<8xf32>
    %76 = vector.multi_reduction <maximumf>, %75, %cst_36 [1] : vector<8x8xf32> to vector<8xf32>
    %77 = vector.shape_cast %76 : vector<8xf32> to vector<8x1xf32>
    %78 = vector.broadcast %77 : vector<8x1xf32> to vector<8x8xf32>
    %79 = arith.subf %75, %78 : vector<8x8xf32>
    %80 = math.exp %79 : vector<8x8xf32>
    %cst_37 = arith.constant dense<0.000000e+00> : vector<8xf32>
    %81 = vector.multi_reduction <add>, %80, %cst_37 [1] : vector<8x8xf32> to vector<8xf32>
    %82 = vector.shape_cast %81 : vector<8xf32> to vector<8x1xf32>
    %cst_38 = arith.constant dense<0.000000e+00> : vector<8x8xf32>
    %83 = tpu.matmul %80, %73, %cst_38 {dimension_numbers = #tpu.dot_dimension_numbers<[1], [0], [0], [1], [0, 0, 1, 1], [], []>} : vector<8x8xf32>, vector<8x8xf32>, vector<8x8xf32> -> vector<8x8xf32>
    %84 = tpu.reciprocal %82 : vector<8x1xf32> -> vector<8x1xf32>
    %85 = vector.broadcast %84 : vector<8x1xf32> to vector<8x8xf32>
    %86 = arith.mulf %83, %85 : vector<8x8xf32>
    %87 = tpu.concatenate %38, %54, %70, %86 in 1 : vector<8x8xf32>, vector<8x8xf32>, vector<8x8xf32>, vector<8x8xf32> -> vector<8x32xf32>
    %c0_39 = arith.constant 0 : index
    %c0_40 = arith.constant 0 : index
    %c0_41 = arith.constant 0 : index
    %88 = vector.load %arg11[%c0_39, %c0_40, %c0_41] : memref<1x8x32xf32, #tpu.memory_space<vmem>>, vector<1x8x32xf32>
    %89 = vector.shape_cast %88 : vector<1x8x32xf32> to vector<8x32xf32>
    %90 = vector.shape_cast %87 : vector<8x32xf32> to vector<1x8x32xf32>
    tpu.vector_store %arg11[%c0_39, %c0_40, %c0_41], %90 {strides = array<i32>} : memref<1x8x32xf32, #tpu.memory_space<vmem>>, vector<1x8x32xf32>,
    return
  }
  func.func @transform_0(%arg0: i32, %arg1: i32) -> (i32, i32, i32) {
    %c0_i32 = arith.constant 0 : i32
    %c0_i32_0 = arith.constant 0 : i32
    %c0_i32_1 = arith.constant 0 : i32
    return %arg0, %c0_i32, %c0_i32_0 : i32, i32, i32
  }
  func.func @transform_1(%arg0: i32, %arg1: i32) -> (i32, i32, i32) {
    %c0_i32 = arith.constant 0 : i32
    %c0_i32_0 = arith.constant 0 : i32
    %c0_i32_1 = arith.constant 0 : i32
    return %arg0, %c0_i32, %c0_i32_0 : i32, i32, i32
  }
  func.func @transform_2(%arg0: i32, %arg1: i32) -> (i32, i32, i32) {
    %c0_i32 = arith.constant 0 : i32
    %c0_i32_0 = arith.constant 0 : i32
    %c0_i32_1 = arith.constant 0 : i32
    %c0_i32_2 = arith.constant 0 : i32
    return %c0_i32, %c0_i32_0, %c0_i32_1 : i32, i32, i32
  }
  func.func @transform_3(%arg0: i32, %arg1: i32) -> (i32, i32) {
    %c0_i32 = arith.constant 0 : i32
    %c0_i32_0 = arith.constant 0 : i32
    return %c0_i32, %arg1 : i32, i32
  }
  func.func @transform_4(%arg0: i32, %arg1: i32) -> (i32, i32) {
    %c0_i32 = arith.constant 0 : i32
    %c0_i32_0 = arith.constant 0 : i32
    return %c0_i32, %arg1 : i32, i32
  }
  func.func @transform_5(%arg0: i32, %arg1: i32) -> (i32, i32) {
    %c0_i32 = arith.constant 0 : i32
    %c0_i32_0 = arith.constant 0 : i32
    return %c0_i32, %arg1 : i32, i32
  }
  func.func @transform_6(%arg0: i32, %arg1: i32) -> (i32, i32) {
    %c0_i32 = arith.constant 0 : i32
    %c0_i32_0 = arith.constant 0 : i32
    return %c0_i32, %arg1 : i32, i32
  }
  func.func @transform_7(%arg0: i32, %arg1: i32) -> (i32, i32) {
    %c0_i32 = arith.constant 0 : i32
    %c0_i32_0 = arith.constant 0 : i32
    return %c0_i32, %arg1 : i32, i32
  }
  func.func @transform_8(%arg0: i32, %arg1: i32) -> (i32, i32) {
    %c0_i32 = arith.constant 0 : i32
    %c0_i32_0 = arith.constant 0 : i32
    return %c0_i32, %arg1 : i32, i32
  }
  func.func @transform_9(%arg0: i32, %arg1: i32) -> (i32, i32, i32) {
    %c0_i32 = arith.constant 0 : i32
    %c0_i32_0 = arith.constant 0 : i32
    return %arg0, %c0_i32, %arg1 : i32, i32, i32
  }
}

</mosaic_0001>

<bundles_post_ra>
// kernel: tpu_custom_call.1
= control target key start
LH: loop header
LB: loop body
LE: loop exit
PB: predicated region body
PF: predicated region fallthrough
CT: control target
= control target key end

     0   :  { %s2885_s0 = inlined_call_operand.hbm [shape: f32[2,8,32], index: 0, kind: input, shape index: {}]   ;;  %s2886_s1 = inlined_call_operand.hbm [shape: f32[2,8,32], index: 1, kind: input, shape index: {}]   ;;  %s2887_s2 = inlined_call_operand.hbm [shape: f32[1,8,8], index: 2, kind: input, shape index: {}]   ;;  %s2888_s3 = inlined_call_operand.hbm [shape: f32[32,32], index: 3, kind: input, shape index: {}]   ;;  %s2889_s4 = inlined_call_operand.hbm [shape: f32[1,32], index: 4, kind: input, shape index: {}]   ;;  %s2890_s5 = inlined_call_operand.hbm [shape: f32[32,32], index: 5, kind: input, shape index: {}]   ;;  %s2891_s6 = inlined_call_operand.hbm [shape: f32[1,32], index: 6, kind: input, shape index: {}]   ;;  %s2892_s7 = inlined_call_operand.hbm [shape: f32[32,32], index: 7, kind: input, shape index: {}]   ;;  %s2893_s8 = inlined_call_operand.hbm [shape: f32[1,32], index: 8, kind: input, shape index: {}]   ;;  %s2894_s9 = inlined_call_operand.hbm [shape: f32[2,8,32], index: 9, kind: output, shape index: {}]  }
   0x1   :  { %2900 = sst [smem:[#allocation26_spill]] %s2887_s2 }
   0x2   :  { %2901 = sst [smem:[#allocation27_spill]] %s2888_s3 }
   0x3   :  { %2902 = sst [smem:[#allocation28_spill]] %s2889_s4 }
   0x4   :  { %2903 = sst [smem:[#allocation29_spill]] %s2890_s5 }
   0x5   :  { %2904 = sst [smem:[#allocation30_spill]] %s2891_s6 }
   0x6   :  { %2905 = sst [smem:[#allocation31_spill]] %s2892_s7 }
   0x7   :  { %2906 = sst [smem:[#allocation32_spill]] %s2894_s9 }
   0x8   :  { %14 = vsyncpa [#allocation3], 0 }
   0x9   :  { %16 = vsyncpa [#allocation3 + $0x1], 0 }
   0xa   :  { %17 = vsyncpa [#allocation6], 0 }
   0xb   :  { %19 = vsyncpa [#allocation6 + $0x1], 0 }
   0xc   :  { %20 = vsyncpa [#allocation9], 0 }
   0xd   :  { %21 = vsyncpa [#allocation12], 0 }
   0xe   :  { %22 = vsyncpa [#allocation15], 0 }
   0xf   :  { %23 = vsyncpa [#allocation4], 0 }
  0x10   :  { %25 = vsyncpa [#allocation4 + $0x1], 0  ;;  %s2424_s30 = smov 0   ;;  %s2426_s10 = smov 0  }
  0x11   :  { %s2428_s11 = smov 0   ;;  %s2430_s12 = smov 0  }
  0x12   :  { %s2432_s13 = smov 0   ;;  %s2434_s14 = smov 0  }
  0x13 LB: > { %2907 = sst [smem:[#allocation25_spill]] %s2343_s12  ;;  %s2455_s15 = sadd.s32 4294967295, %s2351_s14   ;;  %s2351_s14 = sphi %s2434_s14, %s31_s14   ;;  %s2347_s13 = sphi %s2432_s13, %s2942_s13   ;;  %s2343_s12 = sphi %s2430_s12, %s2941_s12   ;;  %s2339_s11 = sphi %s2428_s11, %s2940_s11   ;;  %s2335_s10 = sphi %s2426_s10, %s2939_s10   ;;  %s2331_s30 = sphi %s2424_s30, %s2938_s30  }
  0x14   : > { %p1660_p0 = scmp.ge.s32.totalorder %s2351_s14, 1  ;;  %p2895_p1 = scmp.eq.s32.totalorder %s2455_s15, 0 }
  0x15   : > { %p305_p2 = scmp.lt.s32.totalorder %s2351_s14, 3  ;;  %s2353_s17 = smov [#allocation7]  }
  0x16   : > { %s318_s18 = sshll.u32 %s2353_s17, 4  ;;  %s2354_s19 = smov [#allocation8]   ;;  %s319_s18 = int_to_ptr.vmem [resolvable:$true] %s318_s18 }
  0x17   : > { %p2460_p3 = pnand %p1660_p0, %p305_p2  ;;  %s330_s20 = sshll.u32 %s2354_s19, 4  ;;  %s2473_s20 = int_to_ptr.vmem [resolvable:$true] %s330_s20 }
  0x18   : > { %s2355_s22 = smov [#allocation11]   ;;  %s2910_s2 = sld [smem:[#allocation26_spill]] }
  0x19   : > { %s2908_s16 = scalar_select %p2460_p3, 1, 0 }
  0x1a   : > { %p1862_p5 = pneg %p2460_p3  ;;  %s2475_s23 = sshll.u32 %s2355_s22, 4  ;;  %s359_s23 = int_to_ptr.vmem [resolvable:$true] %s2475_s23 }
  0x1c   : > { %p2469_p6 = pnand %p1862_p5, %p2895_p1 }
  0x1e   : > { %s1993_s26 = scalar_lea.hbm %s2910_s2, 128  ;;  %p2485_p8 = pneg %p2469_p6 }
  0x1f   : > { %p1994_p7 = scmp.ne.s32.totalorder %s2910_s2, %s1993_s26  ;;  %p2000_p11 = scmp.lt.u32.totalorder %s1993_s26, %s2910_s2 }
  0x21   : > { %p1996_p9 = pnand %p2485_p8, %p1994_p7 }
  0x23   : > { %p1997_p10 = pneg %p1996_p9 }
  0x25   : > { %p2002_p12 = pnand %p2000_p11, %p1997_p10 }
  0x27   : > { %2005 = shalt.err (!%p2002_p12)
}
  0x28   : > { %s2006_s22 = scalar_lea.vmem %s319_s18, 128  ;;  %p2014_p5 = scmp.lt.s32.totalorder %s319_s18, %s319_s18 }
  0x29   : > { %p2007_p13 = scmp.ne.s32.totalorder %s319_s18, %s2006_s22  ;;  %p2015_p4 = scmp.lt.s32.totalorder %s2006_s22, %s2006_s22 }
  0x2b   : > { %p2009_p0 = pnand %p2007_p13, %p2485_p8  ;;  %p2016_p1 = por %p2015_p4, %p2014_p5 }
  0x2d   : > { %p2010_p2 = pneg %p2009_p0 }
  0x2f   : > { %p2017_p3 = pnand %p2016_p1, %p2010_p2 }
  0x31   : > { %2020 = shalt.err (!%p2017_p3)
}
  0x32   : > { %1865 = dma.hbm_to_vmem [thread:$0]  (!%p2469_p6), %s2910_s2, 128, %s319_s18, [#allocation6]  }
  0x33   : > { %s2912_s3 = sld [smem:[#allocation27_spill]] }
  0x39   : > { %s2021_s28 = scalar_lea.hbm %s2912_s3, 512 }
  0x3a   : > { %p2022_p7 = scmp.ne.s32.totalorder %s2912_s3, %s2021_s28  ;;  %p2028_p1 = scmp.lt.u32.totalorder %s2021_s28, %s2912_s3 }
  0x3c   : > { %p2024_p9 = pnand %p2022_p7, %p2485_p8 }
  0x3e   : > { %p2025_p4 = pneg %p2024_p9 }
  0x40   : > { %p2030_p3 = pnand %p2028_p1, %p2025_p4 }
  0x42   : > { %2033 = shalt.err (!%p2030_p3)
}
  0x43   : > { %s2034_s18 = scalar_lea.vmem %s2473_s20, 512  ;;  %p2042_p13 = scmp.lt.s32.totalorder %s2473_s20, %s2473_s20 }
  0x44   : > { %p2035_p10 = scmp.ne.s32.totalorder %s2473_s20, %s2034_s18  ;;  %p2043_p0 = scmp.lt.s32.totalorder %s2034_s18, %s2034_s18 }
  0x46   : > { %p2037_p11 = pnand %p2035_p10, %p2485_p8  ;;  %p2044_p2 = por %p2043_p0, %p2042_p13 }
  0x48   : > { %p2038_p12 = pneg %p2037_p11 }
  0x4a   : > { %p2045_p5 = pnand %p2044_p2, %p2038_p12 }
  0x4c   : > { %2048 = shalt.err (!%p2045_p5)
}
  0x4d   : > { %s2356_s24 = smov 128   ;;  %s2357_s9 = smov 8  }
  0x4e   : > { %1868 = dma.hbm_to_vmem [thread:$0]  (!%p2469_p6), %s2912_s3, 512, %s2473_s20, [#allocation9], %s2356_s24, %s2356_s24, %s2357_s9  }
  0x4f   : > { %s2913_s5 = sld [smem:[#allocation29_spill]] }
  0x55   : > { %s2049_s17 = scalar_lea.hbm %s2913_s5, 512 }
  0x56   : > { %p2050_p7 = scmp.ne.s32.totalorder %s2913_s5, %s2049_s17  ;;  %p2056_p1 = scmp.lt.u32.totalorder %s2049_s17, %s2913_s5 }
  0x58   : > { %p2052_p9 = pnand %p2050_p7, %p2485_p8 }
  0x5a   : > { %p2053_p4 = pneg %p2052_p9 }
  0x5c   : > { %p2058_p3 = pnand %p2056_p1, %p2053_p4 }
  0x5e   : > { %2061 = shalt.err (!%p2058_p3)
}
  0x5f   : > { %s2062_s25 = scalar_lea.vmem %s359_s23, 512  ;;  %p2070_p13 = scmp.lt.s32.totalorder %s359_s23, %s359_s23 }
  0x60   : > { %p2063_p10 = scmp.ne.s32.totalorder %s359_s23, %s2062_s25  ;;  %p2071_p0 = scmp.lt.s32.totalorder %s2062_s25, %s2062_s25 }
  0x62   : > { %p2065_p11 = pnand %p2063_p10, %p2485_p8  ;;  %p2072_p2 = por %p2071_p0, %p2070_p13 }
  0x64   : > { %p2066_p12 = pneg %p2065_p11 }
  0x66   : > { %p2073_p5 = pnand %p2072_p2, %p2066_p12 }
  0x68   : > { %2076 = shalt.err (!%p2073_p5)
}
  0x69   : > { %1874 = dma.hbm_to_vmem [thread:$0]  (!%p2469_p6), %s2913_s5, 512, %s359_s23, [#allocation12], %s2356_s24, %s2356_s24, %s2357_s9  }
  0x6a   : > { %s2358_s26 = smov [#allocation14]   ;;  %s2359_s28 = smov [#allocation10]  }
  0x6b   : > { %s386_s27 = sshll.u32 %s2358_s26, 4  ;;  %s346_s17 = sshll.u32 %s2359_s28, 4  ;;  %s387_s27 = int_to_ptr.vmem [resolvable:$true] %s386_s27  ;;  %s347_s17 = int_to_ptr.vmem [resolvable:$true] %s346_s17 }
  0x6c   : > { %s2914_s7 = sld [smem:[#allocation31_spill]] }
  0x72   : > { %s2077_s18 = scalar_lea.hbm %s2914_s7, 512 }
  0x73   : > { %p2078_p7 = scmp.ne.s32.totalorder %s2914_s7, %s2077_s18  ;;  %p2084_p1 = scmp.lt.u32.totalorder %s2077_s18, %s2914_s7 }
  0x75   : > { %p2080_p9 = pnand %p2078_p7, %p2485_p8 }
  0x77   : > { %p2081_p4 = pneg %p2080_p9 }
  0x79   : > { %p2086_p3 = pnand %p2084_p1, %p2081_p4 }
  0x7b   : > { %2089 = shalt.err (!%p2086_p3)
}
  0x7c   : > { %s2090_s23 = scalar_lea.vmem %s387_s27, 512  ;;  %p2098_p13 = scmp.lt.s32.totalorder %s387_s27, %s387_s27 }
  0x7d   : > { %p2091_p10 = scmp.ne.s32.totalorder %s387_s27, %s2090_s23  ;;  %p2099_p0 = scmp.lt.s32.totalorder %s2090_s23, %s2090_s23 }
  0x7f   : > { %p2093_p11 = pnand %p2091_p10, %p2485_p8  ;;  %p2100_p2 = por %p2099_p0, %p2098_p13 }
  0x81   : > { %p2094_p12 = pneg %p2093_p11 }
  0x83   : > { %p2101_p5 = pnand %p2100_p2, %p2094_p12 }
  0x85   : > { %2104 = shalt.err (!%p2101_p5)
}
  0x86   : > { %1880 = dma.hbm_to_vmem [thread:$0]  (!%p2469_p6), %s2914_s7, 512, %s387_s27, [#allocation15], %s2356_s24, %s2356_s24, %s2357_s9  }
  0x87   : > { %s2915_s4 = sld [smem:[#allocation28_spill]] }
  0x8d   : > { %s2105_s28 = scalar_lea.hbm %s2915_s4, 16 }
  0x8e   : > { %p2106_p7 = scmp.ne.s32.totalorder %s2915_s4, %s2105_s28  ;;  %p2112_p1 = scmp.lt.u32.totalorder %s2105_s28, %s2915_s4 }
  0x90   : > { %p2108_p9 = pnand %p2106_p7, %p2485_p8 }
  0x92   : > { %p2109_p4 = pneg %p2108_p9 }
  0x94   : > { %p2114_p3 = pnand %p2112_p1, %p2109_p4 }
  0x96   : > { %2117 = shalt.err (!%p2114_p3)
}
  0x97   : > { %s2118_s2 = scalar_lea.vmem %s347_s17, 16  ;;  %s2125_s24 = scalar_lea.vmem %s347_s17, 32 }
  0x98   : > { %p2119_p10 = scmp.ne.s32.totalorder %s347_s17, %s2118_s2  ;;  %p2126_p13 = scmp.lt.s32.totalorder %s347_s17, %s347_s17 }
  0x99   : > { %p2127_p0 = scmp.lt.s32.totalorder %s2125_s24, %s2118_s2 }
  0x9a   : > { %p2121_p11 = pnand %p2119_p10, %p2485_p8 }
  0x9b   : > { %p2128_p2 = por %p2127_p0, %p2126_p13 }
  0x9c   : > { %p2122_p12 = pneg %p2121_p11 }
  0x9e   : > { %p2129_p5 = pnand %p2128_p2, %p2122_p12 }
  0xa0   : > { %2132 = shalt.err (!%p2129_p5)
}
  0xa1   : > { %1871 = dma.hbm_to_vmem [thread:$0]  (!%p2469_p6), %s2915_s4, 16, %s347_s17, [#allocation9]  }
  0xa2   : > { %s2360_s23 = smov [#allocation13]   ;;  %s2361_s12 = smov [#allocation16]  }
  0xa3   : > { %s374_s3 = sshll.u32 %s2360_s23, 4  ;;  %s402_s20 = sshll.u32 %s2361_s12, 4  ;;  %s375_s3 = int_to_ptr.vmem [resolvable:$true] %s374_s3  ;;  %s403_s20 = int_to_ptr.vmem [resolvable:$true] %s402_s20 }
  0xa4   : > { %s2916_s6 = sld [smem:[#allocation30_spill]] }
  0xaa   : > { %s2133_s19 = scalar_lea.hbm %s2916_s6, 16 }
  0xab   : > { %p2134_p7 = scmp.ne.s32.totalorder %s2916_s6, %s2133_s19  ;;  %p2140_p1 = scmp.lt.u32.totalorder %s2133_s19, %s2916_s6 }
  0xad   : > { %p2136_p9 = pnand %p2134_p7, %p2485_p8 }
  0xaf   : > { %p2137_p4 = pneg %p2136_p9 }
  0xb1   : > { %p2142_p3 = pnand %p2140_p1, %p2137_p4 }
  0xb3   : > { %2145 = shalt.err (!%p2142_p3)
}
  0xb4   : > { %s2146_s17 = scalar_lea.vmem %s375_s3, 16  ;;  %s2153_s24 = scalar_lea.vmem %s375_s3, 32 }
  0xb5   : > { %p2147_p10 = scmp.ne.s32.totalorder %s375_s3, %s2146_s17  ;;  %p2154_p13 = scmp.lt.s32.totalorder %s375_s3, %s375_s3 }
  0xb6   : > { %p2155_p0 = scmp.lt.s32.totalorder %s2153_s24, %s2146_s17 }
  0xb7   : > { %p2149_p11 = pnand %p2147_p10, %p2485_p8 }
  0xb8   : > { %p2156_p2 = por %p2155_p0, %p2154_p13 }
  0xb9   : > { %p2150_p12 = pneg %p2149_p11 }
  0xbb   : > { %p2157_p5 = pnand %p2156_p2, %p2150_p12 }
  0xbd   : > { %2160 = shalt.err (!%p2157_p5)
}
  0xbe   : > { %1877 = dma.hbm_to_vmem [thread:$0]  (!%p2469_p6), %s2916_s6, 16, %s375_s3, [#allocation12]  }
  0xbf   : > { %s2161_s26 = scalar_lea.hbm %s2893_s8, 16 }
  0xc0   : > { %p2162_p7 = scmp.ne.s32.totalorder %s2893_s8, %s2161_s26  ;;  %p2168_p1 = scmp.lt.u32.totalorder %s2161_s26, %s2893_s8 }
  0xc2   : > { %p2164_p9 = pnand %p2162_p7, %p2485_p8 }
  0xc4   : > { %p2165_p4 = pneg %p2164_p9 }
  0xc6   : > { %p2170_p3 = pnand %p2168_p1, %p2165_p4 }
  0xc8   : > { %2173 = shalt.err (!%p2170_p3)
}
  0xc9   : > { %s2174_s25 = scalar_lea.vmem %s403_s20, 16  ;;  %s2181_s3 = scalar_lea.vmem %s403_s20, 32 }
  0xca   : > { %p2175_p10 = scmp.ne.s32.totalorder %s403_s20, %s2174_s25  ;;  %p2182_p13 = scmp.lt.s32.totalorder %s403_s20, %s403_s20 }
  0xcb   : > { %p2183_p0 = scmp.lt.s32.totalorder %s2181_s3, %s2174_s25 }
  0xcc   : > { %p2177_p11 = pnand %p2175_p10, %p2485_p8 }
  0xcd   : > { %p2184_p2 = por %p2183_p0, %p2182_p13 }
  0xce   : > { %p2178_p12 = pneg %p2177_p11 }
  0xd0   : > { %p2185_p5 = pnand %p2184_p2, %p2178_p12 }
  0xd2   : > { %2188 = shalt.err (!%p2185_p5)
}
  0xd3   : > { %1883 = dma.hbm_to_vmem [thread:$0]  (!%p2469_p6), %s2893_s8, 16, %s403_s20, [#allocation15]  }
  0xd4   : > { %s1659_s29 = sadd.s32 4294967294, %s2351_s14   ;;  %s43_s24 = sadd.s32 1, %s2347_s13 }
  0xd5   : > { %s50_s21 = sadd.s32 1, %s2339_s11  ;;  %p45_p8 = scmp.ge.s32.totalorder %s43_s24, 2 }
  0xd6   : > { %p57_p7 = scmp.ne.s32.totalorder %s2339_s11, %s2335_s10  ;;  %p58_p9 = scmp.eq.s32.totalorder %s2351_s14, 0 }
  0xd7   : > { %p63_p4 = scmp.ne.s32.totalorder %s2335_s10, %s2331_s30  ;;  %s2944_s24 = smov (%p45_p8, %s43_s24), 0 }
  0xd8   : > { %p2634_p1 = por %p58_p9, %p57_p7  ;;  %p2918_p3 = scmp.eq.s32.totalorder %s2455_s15, 0 }
  0xd9   : > { %s47_s27 = ssub.s32 %s2347_s13, %s2944_s24  ;;  %p292_p10 = scmp.eq.s32.totalorder %s2455_s15, 1 }
  0xda   : > { %p2640_p6 = por %p2918_p3, %p63_p4  ;;  %p48_p11 = scmp.eq.s32.totalorder %s47_s27, 0 }
  0xdb   : > { %p298_p12 = scmp.eq.s32.totalorder %s1659_s29, 1  ;;  %p2647_p13 = por %p292_p10, %p57_p7 }
  0xdc   : > { %s2919_s20 = scalar_select %p2640_p6, 1, 0 }
  0xdd   : > { %s2920_s23 = scalar_select %p2647_p13, 1, 0 }
  0xde   : > { %p1902_p0 = scmp.lt.s32.totalorder %s2351_s14, 2  ;;  %p2655_p2 = por %p298_p12, %p63_p4 }
  0xdf   : > { %s2653_s12 = scalar_select %p48_p11, %s2339_s11, %s50_s21  }
  0xe0   : > { %s2921_s26 = scalar_select %p2655_p2, 1, 0 }
  0xe1   : > { %s413_s28 = sand.u32 1, %s2339_s11   ;;  %s1670_s22 = sshll.u32 %s2347_s13, 7 }
  0xe2   : > { %s2660_s19 = sshll.u32 %s413_s28, 3  ;;  %s2666_s3 = scalar_lea.hbm %s2885_s0, %s1670_s22 }
  0xe3   : > { %s417_s2 = scalar_lea.vmem [#allocation2], %s2660_s19  ;;  %p2673_p5 = pnand %p1902_p0, %p2634_p1 }
  0xe4   : > { %s424_s17 = sshll.u32 %s417_s2, 4  ;;  %s2680_s18 = scalar_lea.hbm %s2886_s1, %s1670_s22  ;;  %s2669_s17 = int_to_ptr.vmem [resolvable:$true] %s424_s17 }
  0xe5   : > { %s431_s25 = sand.u32 1, %s2351_s14   ;;  %s414_s4 = scalar_lea.sflag [#allocation3], %s413_s28 }
  0xe6   : > { %s2189_s5 = scalar_lea.hbm %s2666_s3, 128  ;;  %p2191_p7 = pneg %p2673_p5 }
  0xe7   : > { %p2190_p8 = scmp.ne.s32.totalorder %s2666_s3, %s2189_s5  ;;  %s2194_s6 = scalar_lea.hbm %s2885_s0, 256 }
  0xe8   : > { %p2195_p1 = scmp.lt.u32.totalorder %s2666_s3, %s2885_s0  ;;  %p2196_p3 = scmp.lt.u32.totalorder %s2194_s6, %s2189_s5 }
  0xe9   : > { %p2192_p9 = pnand %p2191_p7, %p2190_p8  ;;  %p2198_p11 = scmp.lt.u32.totalorder %s2189_s5, %s2666_s3 }
  0xea   : > { %p2197_p10 = por %p2196_p3, %p2195_p1 }
  0xeb   : > { %p2193_p4 = pneg %p2192_p9 }
  0xec   : > { %p2199_p12 = por %p2198_p11, %p2197_p10 }
  0xee   : > { %p2200_p0 = pnand %p2199_p12, %p2193_p4 }
  0xf0   : > { %2203 = shalt.err (!%p2200_p0)
}
  0xf1   : > { %s2204_s28 = scalar_lea.vmem %s2669_s17, 128  ;;  %s2362_s22 = smov [#allocation2]  }
  0xf2   : > { %p2205_p8 = scmp.ne.s32.totalorder %s2669_s17, %s2204_s28  ;;  %s2209_s27 = sshll.u32 %s2362_s22, 4  ;;  %s2210_s27 = int_to_ptr.vmem [resolvable:$false] %s2209_s27 }
  0xf3   : > { %s2211_s7 = scalar_lea.vmem %s2210_s27, 256  ;;  %p2212_p13 = scmp.lt.s32.totalorder %s2669_s17, %s2210_s27 }
  0xf4   : > { %p2207_p9 = pnand %p2205_p8, %p2191_p7  ;;  %p2213_p1 = scmp.lt.s32.totalorder %s2211_s7, %s2204_s28 }
  0xf6   : > { %p2208_p2 = pneg %p2207_p9  ;;  %p2214_p3 = por %p2213_p1, %p2212_p13 }
  0xf8   : > { %p2215_p10 = pnand %p2214_p3, %p2208_p2 }
  0xfa   : > { %2218 = shalt.err (!%p2215_p10)
}
  0xfb   : > { %1887 = dma.hbm_to_vmem [thread:$0]  (!%p2673_p5), %s2666_s3, 128, %s2669_s17, %s414_s4  }
  0xfc   : > { %s435_s5 = scalar_lea.vmem [#allocation5], %s2660_s19  ;;  %s432_s9 = scalar_lea.sflag [#allocation6], %s431_s25 }
  0xfd   : > { %s442_s6 = sshll.u32 %s435_s5, 4  ;;  %s2219_s2 = scalar_lea.hbm %s2680_s18, 128  ;;  %s443_s6 = int_to_ptr.vmem [resolvable:$true] %s442_s6 }
  0xfe   : > { %p2220_p13 = scmp.ne.s32.totalorder %s2680_s18, %s2219_s2  ;;  %s2224_s22 = scalar_lea.hbm %s2886_s1, 256 }
  0xff   : > { %p2225_p11 = scmp.lt.u32.totalorder %s2680_s18, %s2886_s1  ;;  %p2226_p12 = scmp.lt.u32.totalorder %s2224_s22, %s2219_s2 }
 0x100   : > { %p2222_p2 = pnand %p2220_p13, %p2191_p7  ;;  %p2228_p8 = scmp.lt.u32.totalorder %s2219_s2, %s2680_s18 }
 0x101   : > { %p2227_p0 = por %p2226_p12, %p2225_p11 }
 0x102   : > { %p2223_p4 = pneg %p2222_p2 }
 0x103   : > { %p2229_p9 = por %p2228_p8, %p2227_p0 }
 0x105   : > { %p2230_p1 = pnand %p2229_p9, %p2223_p4 }
 0x107   : > { %2233 = shalt.err (!%p2230_p1)
}
 0x108   : > { %s2234_s4 = scalar_lea.vmem %s443_s6, 128  ;;  %s2363_s19 = smov [#allocation5]  }
 0x109   : > { %p2235_p3 = scmp.ne.s32.totalorder %s443_s6, %s2234_s4  ;;  %s2239_s3 = sshll.u32 %s2363_s19, 4  ;;  %s2240_s3 = int_to_ptr.vmem [resolvable:$false] %s2239_s3 }
 0x10a   : > { %s2241_s17 = scalar_lea.vmem %s2240_s3, 256  ;;  %p2242_p2 = scmp.lt.s32.totalorder %s443_s6, %s2240_s3 }
 0x10b   : > { %p2237_p10 = pnand %p2235_p3, %p2191_p7  ;;  %p2243_p6 = scmp.lt.s32.totalorder %s2241_s17, %s2234_s4 }
 0x10d   : > { %p2238_p13 = pneg %p2237_p10  ;;  %p2244_p11 = por %p2243_p6, %p2242_p2 }
 0x10f   : > { %p2245_p12 = pnand %p2244_p11, %p2238_p13 }
 0x111   : > { %2248 = shalt.err (!%p2245_p12)
}
 0x112   : > { %1890 = dma.hbm_to_vmem [thread:$0]  (!%p2673_p5), %s2680_s18, 128, %s443_s6, %s432_s9  }
 0x113   : > { %p2923_p4 = scmp.ne.s32.totalorder %s2908_s16, 0 }
 0x114   : > { %s2733_s25 = sand.u32 (!%p2923_p4), 1, %s2335_s10   ;;  %p2924_p6 = scmp.ne.s32.totalorder (!%p2923_p4), %s2919_s20, 0 }
 0x115   : > { %451 = sbr.rel (%p2923_p4) target bundleno = 1368 (0x558), region = 56  ;;  %s2736_s5 = sshll.u32 (!%p2923_p4), %s2733_s25, 3 }
 0x116   : > { %s454_s2 = scalar_lea.sflag (!%p2923_p4), [#allocation3], %s2733_s25  ;;  %s457_s21 = scalar_lea.vmem (!%p2923_p4), [#allocation2], %s2736_s5 }
 0x11c   : > { %2302 = dma.done.wait (%p2924_p6), %s454_s2, 128  }
 0x11d   : > { %2304 = vsyncadd (%p2924_p6), %s454_s2, 4294967168  ;;  %s462_s16 = sand.u32 1, %s2455_s15   ;;  %s466_s18 = scalar_lea.vmem [#allocation5], %s2736_s5 }
 0x11e   : > { %s463_s29 = scalar_lea.sflag [#allocation6], %s462_s16 }
 0x11f   : > { %2306 = dma.done.wait (%p2924_p6), %s463_s29, 128  }
 0x120   : > { %2308 = vsyncadd (%p2924_p6), %s463_s29, 4294967168  ;;  %p2925_p5 = scmp.eq.s32.totalorder %s2455_s15, 0 }
 0x122   : > { %2310 = dma.done.wait (%p2925_p5), [#allocation6], 128   ;;  %p2926_p7 = pmov %p2925_p5 }
 0x123   : > { %p2927_p0 = pmov %p2925_p5 }
 0x124   : > { %2312 = vsyncadd (%p2926_p7), [#allocation6], 4294967168 }
 0x125   : > { %2314 = dma.done.wait (%p2927_p0), [#allocation9], 528   ;;  %p2928_p8 = pmov %p2927_p0 }
 0x126   : > { %p2929_p9 = pmov %p2927_p0 }
 0x127   : > { %2316 = vsyncadd (%p2928_p8), [#allocation9], 4294966768 }
 0x128   : > { %2318 = dma.done.wait (%p2929_p9), [#allocation12], 528   ;;  %p2930_p1 = pmov %p2927_p0 }
 0x129   : > { %p2931_p3 = pmov %p2927_p0 }
 0x12a   : > { %2320 = vsyncadd (%p2930_p1), [#allocation12], 4294966768 }
 0x12b   : > { %2322 = dma.done.wait (%p2931_p3), [#allocation15], 528   ;;  %p2932_p10 = pmov %p2927_p0 }
 0x12c   : > { %v2364_v0 = vmov 0.0|0.0   ;;  %vm2365_vm0 = vmmov 0   ;;  %v2366_v1 = vmov 0.0   ;;  %v622_v2 = vld [vmem:[#allocation11] sm:$0xff]  ;;  %v623_v3 = vld [vmem:[#allocation11 + $0x8] sm:$0xff]  ;;  %v624_v7 = vld [vmem:[#allocation11 + $0x10] sm:$0xff] }
 0x12d   : > { %2324 = vsyncadd (%p2932_p10), [#allocation15], 4294966768  ;;  %1816 = vmatprep.subr.bf16.mxu1 %v2364_v0  ;;  %1810 = vmatprep.subr.bf16.mxu0 %v2364_v0  ;;  %v536_v4 = vld [vmem:[#allocation8] sm:$0xff]  ;;  %v1817_v5 = vpack.c.bf16 %v623_v3, %v622_v2  ;;  %v537_v6 = vld [vmem:[#allocation8 + $0x8] sm:$0xff]  ;;  %vm547_vm1 = vcmask 261120   ;;  %vm788_vm2 = vcmask 64512  }
 0x12e   : > { %1756 = vmatprep.mubr.msk.f32.mxu1 %vm2365_vm0, %v2366_v1  ;;  %1745 = vmatprep.mubr.msk.f32.mxu0 %vm2365_vm0, %v2366_v1  ;;  %v625_v8 = vld [vmem:[#allocation11 + $0x18] sm:$0xff]  ;;  %v1811_v9 = vpack.c.bf16 %v537_v6, %v536_v4  ;;  %v538_v10 = vld [vmem:[#allocation8 + $0x10] sm:$0xff]  ;;  %v706_v16 = vld [vmem:[#allocation14] sm:$0xff]  ;;  %s2367_s15 = smov 112   ;;  %s2368_s20 = smov 120   ;;  %vm1458_vm3 = vcmask 130048  }
 0x12f   : > { %v539_v11 = vld [vmem:[#allocation8 + $0x18] sm:$0xff]  ;;  %1818 = vmatpush3.bf16.msra.mxu1 %v1817_v5  ;;  %v1820_v12 = vpack.c.bf16 %v625_v8, %v624_v7  ;;  %v535_v14 = vld [vmem:[%s466_s18] sm:$0xff]  ;;  %v1686_v22 = vld [vmem:[#allocation13] ss:$0 sm:$0xff]  ;;  %s2369_s6 = smov 104   ;;  %s2370_s9 = smov 8  }
 0x130   : > { %1812 = vmatpush3.bf16.msra.mxu0 %v1811_v9  ;;  %1819 = vmatprep.subr.bf16.mxu1 %v2364_v0  ;;  %v1814_v13 = vpack.c.bf16 %v539_v11, %v538_v10  ;;  %v534_v15 = vld [vmem:[%s457_s21] sm:$0xff]  ;;  %v707_v17 = vld [vmem:[#allocation14 + $0x8] sm:$0xff]  ;;  %s2933_s28 = sld [smem:[#allocation25_spill]]  ;;  %s2371_s22 = smov 16   ;;  %vm1460_vm4 = vcmask 195584  }
 0x131   : > { %1813 = vmatprep.subr.bf16.mxu0 %v2364_v0  ;;  %v708_v18 = vld [vmem:[#allocation14 + $0x10] sm:$0xff]  ;;  %v1823_v19 = vpack.c.bf16 %v707_v17, %v706_v16  ;;  %v709_v20 = vld [vmem:[#allocation14 + $0x18] sm:$0xff]  ;;  %v1688_v31 = vld [vmem:[#allocation16] ss:$0 sm:$0xff]  ;;  %s2372_s27 = smov 24   ;;  %s533_s4 = scalar_lea.vmem [#allocation17], %s2736_s5 }
 0x132   : > { %v1826_v21 = vpack.c.bf16 %v709_v20, %v708_v18  ;;  %v1684_v23 = vld [vmem:[#allocation10] ss:$0 sm:$0xff]  ;;  %v787_v41 = vld [vmem:[#allocation7] sm:$0xff]  ;;  %s1478_s19 = sshll.u32 %s533_s4, 4  ;;  %s2934_s2 = sld [smem:[#allocation32_spill]]  ;;  %s2837_s19 = int_to_ptr.vmem [resolvable:$true] %s1478_s19 }
 0x133   : > { %1821 = vmatpush3.bf16.msra.mxu1 %v1820_v12  ;;  %s1464_s5 = scalar_lea.sflag [#allocation4], %s2733_s25  ;;  %s2249_s16 = scalar_lea.vmem %s2837_s19, 128 }
 0x134   : > { %1815 = vmatpush3.bf16.msra.mxu0 %v1814_v13  ;;  %1770 = vmatprep.subr.mxu1 %v2366_v1  ;;  %p2250_p13 = scmp.ne.s32.totalorder %s2837_s19, %s2249_s16  ;;  %p2935_p2 = scmp.ne.s32.totalorder %s2920_s23, 0 }
 0x135   : > { %1822 = vmatprep.subr.bf16.mxu0 %v2364_v0  ;;  %s2373_s29 = smov [#allocation17]  }
 0x136   : > { %1757 = vmatmul.mubr.msk.f32.vlgmr.msra.gmra.mrb[0].mxu1 %vm547_vm1, %v535_v14  ;;  %s1703_s7 = sshll.u32 %s2933_s28, 7  ;;  %p2251_p11 = pnand %p2250_p13, %p2935_p2 }
 0x137   : > { %1746 = vmatmul.mubr.msk.f32.vlgmr.msra.gmra.mrb[0].mxu0 %vm547_vm1, %v534_v15  ;;  %1772 = vmatprep.mubr.msk.f32.mxu1 %vm2365_vm0, %v2366_v1  ;;  %s2253_s18 = sshll.u32 %s2373_s29, 4  ;;  %s2254_s18 = int_to_ptr.vmem [resolvable:$false] %s2253_s18 }
 0x138   : > { %1767 = vmatprep.mubr.msk.f32.mxu0 %vm2365_vm0, %v2366_v1  ;;  %1824 = vmatpush3.bf16.msra.mxu0 %v1823_v19  ;;  %s2835_s21 = scalar_lea.hbm %s2934_s2, %s1703_s7  ;;  %p2252_p12 = pneg %p2251_p11 }
 0x139   : > { %1825 = vmatprep.subr.bf16.mxu0 %v2364_v0  ;;  %p2256_p4 = scmp.lt.s32.totalorder %s2837_s19, %s2254_s18 }
 0x13c   : > { %1827 = vmatpush3.bf16.msra.mxu0 %v1826_v21 }
 0x13d   : > { %1780 = vmatprep.subr.mxu0 %v2366_v1 }
 0x13f   : > { %1768 = vmatmul.mubr.msk.f32.vlgmr.msra.gmra.mrb[2].mxu0 %vm547_vm1, %v535_v14 }
 0x140   : > { %1782 = vmatprep.mubr.msk.f32.mxu0 %vm2365_vm0, %v2366_v1 }
 0x209   : > { %v702_v24 = vpop.f32.mrb[0].mxu1 }
 0x20a   : > { %v703_v25 = vadd.f32 %v1686_v22, %v702_v24  ;;  %v617_v26 = vpop.f32.mrb[0].mxu0  ;;  %v1758_v27 = vpop.f32.mrb[1].mxu1 }
 0x20b   : > { %v618_v28 = vadd.f32 %v1684_v23, %v617_v26  ;;  %v1747_v29 = vpop.f32.mrb[1].mxu0 }
 0x20c   : > { %1117 = vrot.lane.b32.xlu1 %v703_v25, %s2367_s15  ;;  %951 = vrot.lane.b32.xlu0 %v703_v25, %s2368_s20 }
 0x20d   : > { %v621_v30 = vmul.f32 5.656854, %v618_v28  ;;  %1771 = vmatpush3.xpose.msk.msra.mxu1 %vm788_vm2, %v703_v25 }
 0x20e   : > { %1775 = vmatprep.subr.mxu1 %v2366_v1 }
 0x210   : > { %1773 = vmatmul.mubr.msk.f32.vlgmr.msra.gmra.mrb[2].mxu1 %vm788_vm2, %v621_v30  ;;  %1115 = vrot.lane.b32.xlu1 %v621_v30, %s2367_s15 }
 0x211   : > { %949 = vrot.lane.b32.xlu0 %v621_v30, %s2368_s20  ;;  %1777 = vmatprep.mubr.msk.f32.mxu1 %vm2365_vm0, %v2366_v1 }
 0x212   : > { %v783_v32 = vpop.f32.mrb[2].mxu0 }
 0x213   : > { %v784_v33 = vadd.f32 %v1688_v31, %v783_v32  ;;  %v1769_v34 = vpop.f32.mrb[3].mxu0 }
 0x214   : > { %1280 = vrot.lane.b32.xlu1 %v621_v30, %s2369_s6 }
 0x215   : > { %1282 = vrot.lane.b32.xlu0 %v703_v25, %s2369_s6  ;;  %1776 = vmatpush3.msra.mxu1 %v784_v33 }
 0x216   : > { %1785 = vmatprep.subr.mxu1 %v2366_v1 }
 0x218   : > { %1037 = vrot.lane.b32.xlu1 %v784_v33, %s2368_s20 }
 0x27e   : > { %v952_v35 = vpop.permute.xlu0 %951  ;;  %v1118_v36 = vpop.permute.xlu1 %1117 }
 0x27f   : > { %1781 = vmatpush3.xpose.msk.msra.mxu0 %vm788_vm2, %v952_v35 }
 0x280   : > { %1790 = vmatprep.subr.mxu0 %v2366_v1 }
 0x282   : > { %v1116_v38 = vpop.permute.xlu1 %1115 }
 0x283   : > { %v950_v37 = vpop.permute.xlu0 %949 }
 0x284   : > { %1783 = vmatmul.mubr.msk.f32.vlgmr.msra.gmra.mrb[4].mxu0 %vm788_vm2, %v950_v37 }
 0x285   : > { %1791 = vmatpush3.xpose.msk.msra.mxu0 %vm788_vm2, %v1118_v36  ;;  %1792 = vmatprep.mubr.msk.f32.mxu0 %vm2365_vm0, %v2366_v1 }
 0x286   : > { %1800 = vmatprep.subr.mxu0 %v2366_v1  ;;  %v1281_v40 = vpop.permute.xlu1 %1280 }
 0x287   : > { %v1283_v39 = vpop.permute.xlu0 %1282 }
 0x288   : > { %1793 = vmatmul.mubr.msk.f32.vlgmr.msra.gmra.mrb[6].mxu0 %vm788_vm2, %v1116_v38 }
 0x289   : > { %1801 = vmatpush3.xpose.msk.msra.mxu0 %vm788_vm2, %v1283_v39  ;;  %1802 = vmatprep.mubr.msk.f32.mxu0 %vm2365_vm0, %v2366_v1 }
 0x28a   : > { %v1038_v61 = vpop.permute.xlu1 %1037 }
 0x28c   : > { %1803 = vmatmul.mubr.msk.f32.vlgmr.msra.gmra.mrb[8].mxu0 %vm788_vm2, %v1281_v40 }
 0x2e3   : > { %v861_v42 = vpop.f32.mrb[2].mxu1 }
 0x2e4   : > { %v862_v43 = vadd.f32 %v861_v42, %v787_v41  ;;  %v1774_v44 = vpop.f32.mrb[3].mxu1 }
 0x2e6   : > { %v865_v45 = vsel %vm788_vm2, %v862_v43, -inf }
 0x2e7   : > { %866 = vmax.xlane.f32.xlu0 %v865_v45 }
 0x357   : > { %v1023_v46 = vpop.f32.mrb[4].mxu0 }
 0x358   : > { %v1024_v47 = vadd.f32 %v1023_v46, %v787_v41  ;;  %v1784_v48 = vpop.f32.mrb[5].mxu0 }
 0x35a   : > { %v1027_v49 = vsel %vm788_vm2, %v1024_v47, -inf }
 0x35b   : > { %1028 = vmax.xlane.f32.xlu1 %v1027_v49  ;;  %v1189_v50 = vpop.f32.mrb[6].mxu0 }
 0x35c   : > { %v1190_v51 = vadd.f32 %v1189_v50, %v787_v41  ;;  %v1794_v52 = vpop.f32.mrb[7].mxu0 }
 0x35e   : > { %v1193_v53 = vsel %vm788_vm2, %v1190_v51, -inf }
 0x35f   : > { %1194 = vmax.xlane.f32.xlu0 %v1193_v53  ;;  %v1354_v54 = vpop.f32.mrb[8].mxu0 }
 0x360   : > { %v1355_v55 = vadd.f32 %v1354_v54, %v787_v41  ;;  %v1804_v56 = vpop.f32.mrb[9].mxu0 }
 0x362   : > { %v1358_v57 = vsel %vm788_vm2, %v1355_v55, -inf }
 0x363   : > { %1359 = vmax.xlane.f32.xlu0 %v1358_v57 }
 0x36c   : > { %1367 = vrot.lane.b32.xlu1 %v784_v33, %s2369_s6 }
 0x374   : > { %v867_v58 = vpop.xlane.xlu0 %866 }
 0x375   : > { %v868_v59 = vsub.f32 %v862_v43, %v867_v58 }
 0x377   : > { %v869_v60 = vmul.f32 1.442695, %v868_v59 }
 0x379   : > { %1977 = vpow2.f32 %v869_v60  ;;  %1202 = vrot.lane.b32.xlu0 %v784_v33, %s2367_s15  ;;  %s2255_s15 = scalar_lea.vmem %s2254_s18, 256 }
 0x37a   : > { %p2257_p6 = scmp.lt.s32.totalorder %s2255_s15, %s2249_s16 }
 0x37c   : > { %p2258_p5 = por %p2257_p6, %p2256_p4 }
 0x37e   : > { %p2259_p7 = pnand %p2258_p5, %p2252_p12 }
 0x383   : > { %v1978_v62 = vpop.eup %1977 }
 0x384   : > { %1778 = vmatmul.mubr.msk.f32.vlgmr.msra.gmra.mrb[4].mxu1 %vm788_vm2, %v1978_v62  ;;  %v871_v14 = vsel %vm788_vm2, %v1978_v62, 0.0 }
 0x385   : > { %1786 = vmatpush3.msra.mxu1 %v1038_v61  ;;  %1787 = vmatprep.mubr.msk.f32.mxu1 %vm2365_vm0, %v2366_v1 }
 0x386   : > { %1795 = vmatprep.subr.mxu1 %v2366_v1 }
 0x3e8   : > { %v1029_v63 = vpop.xlane.xlu1 %1028 }
 0x3e9   : > { %v1030_v0 = vsub.f32 %v1024_v47, %v1029_v63 }
 0x3eb   : > { %v1031_v2 = vmul.f32 1.442695, %v1030_v0 }
 0x3ec   : > { %v1195_v3 = vpop.xlane.xlu0 %1194  ;;  %v1368_v13 = vpop.permute.xlu1 %1367 }
 0x3ed   : > { %1979 = vpow2.f32 %v1031_v2  ;;  %v1196_v4 = vsub.f32 %v1190_v51, %v1195_v3 }
 0x3ef   : > { %v1197_v5 = vmul.f32 1.442695, %v1196_v4 }
 0x3f0   : > { %v1360_v6 = vpop.xlane.xlu0 %1359 }
 0x3f1   : > { %1981 = vpow2.f32 %v1197_v5  ;;  %v1361_v7 = vsub.f32 %v1355_v55, %v1360_v6 }
 0x3f3   : > { %v1362_v8 = vmul.f32 1.442695, %v1361_v7 }
 0x3f4   : > { %v1203_v10 = vpop.permute.xlu0 %1202 }
 0x3f5   : > { %1983 = vpow2.f32 %v1362_v8 }
 0x3f7   : > { %v1980_v9 = vpop.eup %1979 }
 0x3f8   : > { %1788 = vmatmul.mubr.msk.f32.vlgmr.msra.gmra.mrb[6].mxu1 %vm788_vm2, %v1980_v9  ;;  %v1033_v11 = vsel %vm788_vm2, %v1980_v9, 0.0 }
 0x3f9   : > { %1796 = vmatpush3.msra.mxu1 %v1203_v10  ;;  %1034 = vadd.xlane.f32.xlu1 %v1033_v11 }
 0x3fa   : > { %1797 = vmatprep.mubr.msk.f32.mxu1 %vm2365_vm0, %v2366_v1  ;;  %1805 = vmatprep.subr.mxu1 %v2366_v1 }
 0x3fb   : > { %v1982_v12 = vpop.eup %1981 }
 0x3fc   : > { %1798 = vmatmul.mubr.msk.f32.vlgmr.msra.gmra.mrb[8].mxu1 %vm788_vm2, %v1982_v12  ;;  %v1199_v15 = vsel %vm788_vm2, %v1982_v12, 0.0 }
 0x3fd   : > { %1806 = vmatpush3.msra.mxu1 %v1368_v13  ;;  %872 = vadd.xlane.f32.xlu1 %v871_v14 }
 0x3fe   : > { %1200 = vadd.xlane.f32.xlu0 %v1199_v15  ;;  %1807 = vmatprep.mubr.msk.f32.mxu1 %vm2365_vm0, %v2366_v1 }
 0x3ff   : > { %v1984_v16 = vpop.eup %1983 }
 0x400   : > { %1808 = vmatmul.mubr.msk.f32.vlgmr.msra.gmra.mrb[10].mxu1 %vm788_vm2, %v1984_v16  ;;  %v1364_v17 = vsel %vm788_vm2, %v1984_v16, 0.0 }
 0x402   : > { %1365 = vadd.xlane.f32.xlu0 %v1364_v17 }
 0x457   : > { %v943_v18 = vpop.f32.mrb[4].mxu1 }
 0x458   : > { %v1779_v19 = vpop.f32.mrb[5].mxu1 }
 0x486   : > { %v1035_v20 = vpop.xlane.xlu1 %1034 }
 0x487   : > { %1985 = vrcp.f32 %v1035_v20 }
 0x48a   : > { %v873_v34 = vpop.xlane.xlu1 %872 }
 0x48b   : > { %v1201_v21 = vpop.xlane.xlu0 %1200 }
 0x48c   : > { %1987 = vrcp.f32 %v1201_v21 }
 0x48f   : > { %v1366_v22 = vpop.xlane.xlu0 %1365 }
 0x490   : > { %1989 = vrcp.f32 %v1366_v22 }
 0x491   : > { %v1986_v23 = vpop.eup %1985  ;;  %1991 = vrcp.f32 %v873_v34 }
 0x496   : > { %v1988_v1 = vpop.eup %1987 }
 0x49a   : > { %v1990_v30 = vpop.eup %1989 }
 0x49b   : > { %v1992_v35 = vpop.eup %1991 }
 0x49c   : > { %v948_v38 = vmul.f32 %v1992_v35, %v943_v18 }
 0x4cb   : > { %v1109_v24 = vpop.f32.mrb[6].mxu1 }
 0x4cc   : > { %v1114_v25 = vmul.f32 %v1986_v23, %v1109_v24  ;;  %v1789_v26 = vpop.f32.mrb[7].mxu1 }
 0x4ce   : > { %1446 = vrot.lane.b32.xlu0 %v1114_v25, %s2370_s9 }
 0x4cf   : > { %v1274_v27 = vpop.f32.mrb[8].mxu1 }
 0x4d0   : > { %v1279_v28 = vmul.f32 %v1988_v1, %v1274_v27  ;;  %v1799_v29 = vpop.f32.mrb[9].mxu1 }
 0x4d2   : > { %1450 = vrot.lane.b32.xlu1 %v1279_v28, %s2371_s22 }
 0x4d3   : > { %v1439_v31 = vpop.f32.mrb[10].mxu1 }
 0x4d4   : > { %v1444_v32 = vmul.f32 %v1990_v30, %v1439_v31  ;;  %v1809_v33 = vpop.f32.mrb[11].mxu1 }
 0x4d6   : > { %1454 = vrot.lane.b32.xlu1 %v1444_v32, %s2372_s27 }
 0x540   : > { %v1447_v36 = vpop.permute.xlu0 %1446 }
 0x541   : > { %v1457_v39 = vsel %vm788_vm2, %v948_v38, %v1447_v36 }
 0x544   : > { %v1451_v37 = vpop.permute.xlu1 %1450 }
 0x545   : > { %v1459_v40 = vsel %vm1458_vm3, %v1457_v39, %v1451_v37 }
 0x548   : > { %v1455_v41 = vpop.permute.xlu1 %1454 }
 0x549   : > { %v1461_v42 = vsel %vm1460_vm4, %v1459_v40, %v1455_v41 }
 0x54a   : > { %1462 = vst.msk [vmem:[%s533_s4] sm:$0xff] %vm547_vm1, %v1461_v42 }
 0x54b   : > { %2262 = shalt.err (!%p2259_p7)
}
 0x54c   : > { %s2263_s25 = scalar_lea.hbm %s2835_s21, 128  ;;  %s2267_s9 = scalar_lea.hbm %s2934_s2, 256 }
 0x54d   : > { %p2264_p0 = scmp.ne.s32.totalorder %s2835_s21, %s2263_s25  ;;  %p2268_p1 = scmp.lt.u32.totalorder %s2835_s21, %s2934_s2 }
 0x54e   : > { %p2269_p3 = scmp.lt.u32.totalorder %s2267_s9, %s2263_s25  ;;  %p2271_p13 = scmp.lt.u32.totalorder %s2263_s25, %s2835_s21 }
 0x54f   : > { %p2265_p8 = pnand %p2264_p0, %p2935_p2 }
 0x550   : > { %p2270_p10 = por %p2269_p3, %p2268_p1 }
 0x551   : > { %p2266_p9 = pneg %p2265_p8 }
 0x552   : > { %p2272_p11 = por %p2271_p13, %p2270_p10 }
 0x554   : > { %p2273_p12 = pnand %p2272_p11, %p2266_p9 }
 0x556   : > { %2276 = shalt.err (!%p2273_p12)
}
 0x557   : > { %1860 = dma.vmem_to_hbm [thread:$0]  (%p2935_p2), %s2837_s19, 128, %s2835_s21, %s1464_s5  }
 0x558 PF: > { %s1490_s27 = sand.u32 1, %s2331_s30   ;;  %p2936_p4 = scmp.ne.s32.totalorder %s2921_s26, 0 }
 0x559   : > { %p2937_p6 = scmp.ge.s32.totalorder %s2351_s14, 2  ;;  %s1491_s7 = scalar_lea.sflag [#allocation4], %s1490_s27 }
 0x55b   : > { %p1892_p5 = pnand %p2937_p6, %p2936_p4 }
 0x55d   : > { %2326 = dma.done.wait (!%p1892_p5), %s1491_s7, 128  }
 0x55e   : > { %2328 = vsyncadd (!%p1892_p5), %s1491_s7, 4294967168  ;;  %s31_s14 = sadd.s32 1, %s2351_s14   ;;  %s2938_s30 = smov %s2335_s10 }
 0x55f   : > { %p28_p7 = scmp.ge.s32.totalorder %s31_s14, 4   ;;  %s2939_s10 = smov %s2339_s11 }
 0x560   : > { %s2940_s11 = smov %s2653_s12  ;;  %s2941_s12 = smov %s2347_s13 }
 0x561   : > { %s2942_s13 = smov %s2944_s24  ;;  %30 = sbr.rel (!%p28_p7) target bundleno = 19 (0x13), region = 148 }
 0x568   :  { %1496 = vsyncpa [#allocation3], 1 }
 0x569   :  { %1498 = vsyncpa [#allocation3 + $0x1], 1 }
 0x56a   :  { %1499 = vsyncpa [#allocation6], 1 }
 0x56b   :  { %1501 = vsyncpa [#allocation6 + $0x1], 1 }
 0x56c   :  { %1502 = vsyncpa [#allocation9], 1 }
 0x56d   :  { %1503 = vsyncpa [#allocation12], 1 }
 0x56e   :  { %1504 = vsyncpa [#allocation15], 1 }
 0x56f   :  { %1505 = vsyncpa [#allocation4], 1 }
 0x570   :  { %1507 = vsyncpa [#allocation4 + $0x1], 1 }

</bundles_post_ra>
